<compile_context>
chip_gen: v6e
topology: v6e:2x2x1
jax: 0.10.0
libtpu: 0.0.40
codegen_flags: <defaults>
</compile_context>

<pallas_src>
import jax
import jax.numpy as jnp
from jax.experimental import pallas as pl
from jax.experimental.pallas import tpu as pltpu


# --------------------------------------------------------------------------- #
# Hardware introspection (best effort, safe defaults).
# --------------------------------------------------------------------------- #
def _tpu_info():
    """Returns (vmem_capacity_bytes, tensorcores_per_device) best-effort."""
    vmem_cap = 64 << 20          # conservative default: true on every target
    n_cores = 1
    try:
        info = pltpu.get_tpu_info()
        cap = getattr(info, "vmem_capacity_bytes", None)
        if cap:
            vmem_cap = int(cap)
        for name in ("num_cores", "core_count", "num_tensorcores",
                     "tensorcore_count"):
            val = getattr(info, name, None)
            if val:
                n_cores = int(val)
                break
    except Exception:
        pass
    if n_cores == 1:
        try:
            n_cores = int(getattr(jax.devices()[0], "num_cores", 1) or 1)
        except Exception:
            n_cores = 1
    return vmem_cap, n_cores


# --------------------------------------------------------------------------- #
# Tile selection (divisor based -> no padding of the big tensor).
# --------------------------------------------------------------------------- #
def _pick_seq_tile(S, bytes_per_token, target_bytes):
    """Returns (ts, s_padded). Prefers divisors of S; padding is a rare fallback."""
    if S * bytes_per_token <= target_bytes:
        return int(S), int(S)
    for align in (512, 256, 128, 8):
        divs = [d for d in range(align, S, align)
                if S % d == 0 and d * bytes_per_token <= target_bytes]
        if divs:
            return int(max(divs)), int(S)
    # Rare fallback (e.g. prime S with huge rows): pad the sequence axis.
    ts = max(128, (target_bytes // max(bytes_per_token, 1)) // 128 * 128)
    s_pad = ((S + ts - 1) // ts) * ts
    return int(ts), int(s_pad)


def _pick_batch_tile(B, row_block_bytes, target_bytes):
    """Largest divisor of B whose grouped block stays under the byte target."""
    tb_fit = max(1, int(target_bytes // max(row_block_bytes, 1)))
    tb = 1
    for d in range(1, min(B, tb_fit) + 1):
        if B % d == 0:
            tb = d
    return int(tb)


# --------------------------------------------------------------------------- #
# Kernels.
# --------------------------------------------------------------------------- #
def _avg_pool_direct_kernel(h_ref, m_ref, inv_ref, o_ref):
    # h_ref: [tb, S, th]  m_ref: [1, tb, S]  inv_ref: [1, tb, 1]  o_ref: [1, tb, th]
    m = m_ref[0]                                                    # [tb, S]
    acc = jnp.einsum("bks,bsh->bkh", m[:, None, :], h_ref[...],
                     preferred_element_type=jnp.float32)            # [tb, 1, th]
    o_ref[0] = (acc[:, 0, :] * inv_ref[0]).astype(o_ref.dtype)


def _make_avg_pool_acc_kernel(ts):
    def kernel(h_ref, m_ref, inv_ref, o_ref, acc_ref):
        # h_ref:   [tb, ts, th]   hidden-state tile
        # m_ref:   [1, tb, S]     full mask rows, resident across the seq axis
        # inv_ref: [1, tb, 1]     precomputed 1/denominator (f32)
        # o_ref:   [1, tb, th]    output tile, resident across the seq axis
        # acc_ref: [tb, th]       dense f32 accumulator
        s = pl.program_id(2)

        @pl.when(s == 0)
        def _():
            acc_ref[...] = jnp.zeros_like(acc_ref)

        start = pl.multiple_of(s * ts, ts)
        m = m_ref[0, :, pl.ds(start, ts)]                           # [tb, ts]
        part = jnp.einsum("bks,bsh->bkh", m[:, None, :], h_ref[...],
                          preferred_element_type=jnp.float32)       # [tb, 1, th]
        acc_ref[...] += part[:, 0, :]

        @pl.when(s == pl.num_programs(2) - 1)
        def _():
            o_ref[0] = (acc_ref[...] * inv_ref[0]).astype(o_ref.dtype)

    return kernel


# --------------------------------------------------------------------------- #
# Wrapper.
# --------------------------------------------------------------------------- #
def average_pooler(last_hidden, attention_mask, *, target_block_bytes=None):
    """last_hidden: [B, S, H]; attention_mask: [B, S] (any numeric dtype)."""
    B, S, H = last_hidden.shape
    dtype = last_hidden.dtype
    itemsize = jnp.dtype(dtype).itemsize

    vmem_cap, n_cores = _tpu_info()
    if target_block_bytes is None:
        # ~8 MiB blocks keep the fixed per-grid-step overhead well under 10% of
        # the HBM roofline on v6e/v7x; harmless (just unnecessary) on v5e.
        target_block_bytes = int(min(8 << 20, max(1 << 20, vmem_cap // 8)))

    # Exact per-row reciprocal denominator, always counted in f32.
    inv_den = 1.0 / jnp.sum(attention_mask.astype(jnp.float32), axis=-1)   # [B]

    # ---- tiling ----
    ts, s_pad = _pick_seq_tile(S, H * itemsize, target_block_bytes)
    seq_tiles = s_pad // ts
    tb = _pick_batch_tile(B, ts * H * itemsize, target_block_bytes)
    b_groups = B // tb

    # Split H only when needed to give multi-TensorCore chips (v7x) >= n_cores
    # parallel blocks; single-core v5e/v6e keep th == H (no block shrink).
    h_groups = 1
    if n_cores > 1 and b_groups < n_cores and H % (128 * n_cores) == 0:
        h_groups = n_cores
    th = H // h_groups

    h = last_hidden
    m = attention_mask.astype(dtype)
    if s_pad != S:  # rare fallback; zero padding contributes exactly zero
        h = jnp.pad(h, ((0, 0), (0, s_pad - S), (0, 0)))
        m = jnp.pad(m, ((0, 0), (0, s_pad - S)))
    m3 = m.reshape(b_groups, tb, s_pad)                   # dense, lane-major rows
    inv3 = inv_den.astype(jnp.float32).reshape(b_groups, tb, 1)

    # ---- per-generation VMEM budget ----
    hidden_blk = tb * ts * th * itemsize
    mask_blk = tb * s_pad * itemsize
    out_blk = tb * th * itemsize
    acc_blk = tb * th * 4
    needed = 2 * (hidden_blk + mask_blk + out_blk) + acc_blk + (4 << 20)
    vmem_limit = int(min(max(needed, 32 << 20), max(32 << 20, (vmem_cap * 3) // 4)))

    cost = pl.CostEstimate(
        flops=2 * B * s_pad * H,
        transcendentals=0,
        bytes_accessed=(B * s_pad * H + B * s_pad + B * H) * itemsize + B * 4,
    )

    if seq_tiles > 1:
        kernel = _make_avg_pool_acc_kernel(ts)
        grid = (b_groups, h_groups, seq_tiles)
        in_specs = [
            pl.BlockSpec((tb, ts, th), lambda b, hh, s: (b, s, hh)),   # hidden
            pl.BlockSpec((1, tb, s_pad), lambda b, hh, s: (b, 0, 0)),  # mask (resident)
            pl.BlockSpec((1, tb, 1), lambda b, hh, s: (b, 0, 0)),      # 1/denominator
        ]
        out_specs = pl.BlockSpec((1, tb, th), lambda b, hh, s: (b, 0, hh))
        scratch_shapes = [pltpu.VMEM((tb, th), jnp.float32)]
        dim_sem = ("parallel", "parallel", "arbitrary")
    else:
        kernel = _avg_pool_direct_kernel
        grid = (b_groups, h_groups)
        in_specs = [
            pl.BlockSpec((tb, s_pad, th), lambda b, hh: (b, 0, hh)),
            pl.BlockSpec((1, tb, s_pad), lambda b, hh: (b, 0, 0)),
            pl.BlockSpec((1, tb, 1), lambda b, hh: (b, 0, 0)),
        ]
        out_specs = pl.BlockSpec((1, tb, th), lambda b, hh: (b, 0, hh))
        scratch_shapes = []
        dim_sem = ("parallel", "parallel")

    out = pl.pallas_call(
        kernel,
        out_shape=jax.ShapeDtypeStruct((b_groups, tb, H), dtype),
        grid_spec=pltpu.PrefetchScalarGridSpec(
            num_scalar_prefetch=0,
            grid=grid,
            in_specs=in_specs,
            out_specs=out_specs,
            scratch_shapes=scratch_shapes,
        ),
        compiler_params=pltpu.CompilerParams(
            dimension_semantics=dim_sem,
            vmem_limit_bytes=vmem_limit,
        ),
        cost_estimate=cost,
    )(h, m3, inv3)

    return out.reshape(B, H)


# --------------------------------------------------------------------------- #
# Reference + demo.
# --------------------------------------------------------------------------- #
def reference_pooler(last_hidden, attention_mask):
    mask = attention_mask.astype(last_hidden.dtype)
    num = jnp.sum(last_hidden * mask[..., None], axis=1)
    den = jnp.sum(mask, axis=-1, keepdims=True)
    return num / den


if __name__ == "__main__":
    key = jax.random.PRNGKey(0)

    B, S, H = 2, 8, 32
    last_hidden = jax.random.normal(key, (B, S, H), dtype=jnp.float32)
    # attention mask: first `length` tokens valid per row (always >= 1 valid).
    lengths = jnp.array([6, 3], dtype=jnp.int32)
    attention_mask = (jnp.arange(S)[None, :] < lengths[:, None]).astype(jnp.float32)

    out = average_pooler(last_hidden, attention_mask)
    out = jax.block_until_ready(out)

    ref = reference_pooler(last_hidden, attention_mask)
    assert out.shape == (B, H)
    assert jnp.allclose(out, ref, atol=1e-5, rtol=1e-5), float(
        jnp.max(jnp.abs(out - ref)))

    print("KERNEL_OK")
</pallas_src>

<mosaic_0001>
module attributes {stable_mosaic.version = 11 : i64} {
  func.func @_avg_pool_direct_kernel(%arg0: i32, %arg1: i32, %arg2: memref<2x8x32xf32, #tpu.memory_space<vmem>>, %arg3: memref<1x2x8xf32, #tpu.memory_space<vmem>>, %arg4: memref<1x2x1xf32, #tpu.memory_space<vmem>>, %arg5: memref<1x2x32xf32, #tpu.memory_space<vmem>>) attributes {dimension_semantics = [#tpu.dimension_semantics<parallel>, #tpu.dimension_semantics<parallel>], iteration_bounds = array<i64: 1, 1>, scalar_prefetch = 0 : i64, scratch_operands = 0 : i64, tpu.core_type = #tpu.core_type<tc>, window_params = [{transform_indices = @transform_0, window_bounds = array<i64: 2, 8, 32>}, {transform_indices = @transform_1, window_bounds = array<i64: 1, 2, 8>}, {transform_indices = @transform_2, window_bounds = array<i64: 1, 2, 1>}, {transform_indices = @transform_3, window_bounds = array<i64: 1, 2, 32>}]} {
    %c0 = arith.constant 0 : index
    %c0_0 = arith.constant 0 : index
    %c0_1 = arith.constant 0 : index
    %0 = vector.load %arg3[%c0, %c0_0, %c0_1] : memref<1x2x8xf32, #tpu.memory_space<vmem>>, vector<1x2x8xf32>
    %1 = vector.shape_cast %0 : vector<1x2x8xf32> to vector<2x8xf32>
    %2 = vector.shape_cast %1 : vector<2x8xf32> to vector<2x1x8xf32>
    %c0_2 = arith.constant 0 : index
    %c0_3 = arith.constant 0 : index
    %c0_4 = arith.constant 0 : index
    %3 = vector.load %arg2[%c0_2, %c0_3, %c0_4] : memref<2x8x32xf32, #tpu.memory_space<vmem>>, vector<2x8x32xf32>
    "tpu.trace_start"() <{level = 10 : i32, message = "bks,bsh->bkh"}> : () -> ()
    %cst = arith.constant dense<0.000000e+00> : vector<2x1x32xf32>
    %4 = tpu.matmul %2, %3, %cst {dimension_numbers = #tpu.dot_dimension_numbers<[2], [1], [1], [2], [0, 0, 0, 1, 1, 2], [0], [0]>} : vector<2x1x8xf32>, vector<2x8x32xf32>, vector<2x1x32xf32> -> vector<2x1x32xf32>
    "tpu.trace_stop"() : () -> ()
    %5 = vector.shape_cast %4 : vector<2x1x32xf32> to vector<2x32xf32>
    %c0_5 = arith.constant 0 : index
    %c0_6 = arith.constant 0 : index
    %c0_7 = arith.constant 0 : index
    %6 = vector.load %arg4[%c0_5, %c0_6, %c0_7] : memref<1x2x1xf32, #tpu.memory_space<vmem>>, vector<1x2x1xf32>
    %7 = vector.shape_cast %6 : vector<1x2x1xf32> to vector<2x1xf32>
    %8 = vector.broadcast %7 : vector<2x1xf32> to vector<2x32xf32>
    %9 = arith.mulf %5, %8 : vector<2x32xf32>
    %c0_8 = arith.constant 0 : index
    %c0_9 = arith.constant 0 : index
    %c0_10 = arith.constant 0 : index
    %10 = vector.load %arg5[%c0_8, %c0_9, %c0_10] : memref<1x2x32xf32, #tpu.memory_space<vmem>>, vector<1x2x32xf32>
    %11 = vector.shape_cast %10 : vector<1x2x32xf32> to vector<2x32xf32>
    %12 = vector.shape_cast %9 : vector<2x32xf32> to vector<1x2x32xf32>
    tpu.vector_store %arg5[%c0_8, %c0_9, %c0_10], %12 {strides = array<i32>} : memref<1x2x32xf32, #tpu.memory_space<vmem>>, vector<1x2x32xf32>,
    return
  }
  func.func @transform_0(%arg0: i32, %arg1: i32) -> (i32, i32, i32) {
    %c0_i32 = arith.constant 0 : i32
    %c0_i32_0 = arith.constant 0 : i32
    return %arg0, %c0_i32, %arg1 : i32, i32, i32
  }
  func.func @transform_1(%arg0: i32, %arg1: i32) -> (i32, i32, i32) {
    %c0_i32 = arith.constant 0 : i32
    %c0_i32_0 = arith.constant 0 : i32
    %c0_i32_1 = arith.constant 0 : i32
    return %arg0, %c0_i32, %c0_i32_0 : i32, i32, i32
  }
  func.func @transform_2(%arg0: i32, %arg1: i32) -> (i32, i32, i32) {
    %c0_i32 = arith.constant 0 : i32
    %c0_i32_0 = arith.constant 0 : i32
    %c0_i32_1 = arith.constant 0 : i32
    return %arg0, %c0_i32, %c0_i32_0 : i32, i32, i32
  }
  func.func @transform_3(%arg0: i32, %arg1: i32) -> (i32, i32, i32) {
    %c0_i32 = arith.constant 0 : i32
    %c0_i32_0 = arith.constant 0 : i32
    return %arg0, %c0_i32, %arg1 : i32, i32, i32
  }
}

</mosaic_0001>

<bundles_post_ra>
// kernel: tpu_custom_call.1
= control target key start
LH: loop header
LB: loop body
LE: loop exit
PB: predicated region body
PF: predicated region fallthrough
CT: control target
= control target key end

     0   :  { %8 = vsyncpa [#allocation3], 0  ;;  %s343_s0 = inlined_call_operand.hbm [shape: f32[2,8,32], index: 0, kind: input, shape index: {}]   ;;  %s344_s1 = inlined_call_operand.vmem [shape: f32[1,2,8], index: 1, kind: input, shape index: {}]   ;;  %s345_s2 = inlined_call_operand.vmem [shape: f32[1,2,1], index: 2, kind: input, shape index: {}]   ;;  %s346_s3 = inlined_call_operand.hbm [shape: f32[1,2,32], index: 3, kind: output, shape index: {}]  }
   0x1   :  { %9 = vsyncpa [#allocation4], 0  ;;  %s303_s12 = smov [#allocation2]  }
   0x2   :  { %s15_s13 = sshll.u32 %s303_s12, 4  ;;  %s16_s13 = int_to_ptr.vmem [resolvable:$true] %s15_s13 }
   0x3   :  { %s267_s14 = scalar_lea.vmem %s16_s13, 256  ;;  %p272_p1 = scmp.lt.s32.totalorder %s16_s13, %s16_s13 }
   0x4   :  { %p268_p0 = scmp.ne.s32.totalorder %s16_s13, %s267_s14  ;;  %p273_p2 = scmp.lt.s32.totalorder %s267_s14, %s267_s14 }
   0x6   :  { %p274_p3 = por %p273_p2, %p272_p1 }
   0x8   :  { %p275_p4 = pnand %p274_p3, %p268_p0 }
   0xa   :  { %278 = shalt.err (!%p275_p4)
}
   0xb   :  { %s304_s15 = smov 128   ;;  %s305_s16 = smov 8  }
   0xc   :  { %21 = dma.hbm_to_vmem [thread:$0]  %s343_s0, 256, %s16_s13, [#allocation3], %s304_s15, %s304_s15, %s305_s16  }
   0xd   :  { %299 = dma.done.wait [#allocation3], 256  }
   0xe   :  { %300 = vsyncadd [#allocation3], 4294967040  ;;  %v42_v0 = vlaneseq  ;;  %v306_v1 = vmov 0.0   ;;  %vm307_vm0 = vmmov 0   ;;  %v308_v2 = vmov 1966171168  }
   0xf   :  { %240 = vmatprep.subr.mxu0 %v306_v1  ;;  %242 = vmatprep.mubr.msk.f32.mxu0 %vm307_vm0, %v306_v1  ;;  %v40_v3 = vunpack.c.l.s4 %v308_v2  ;;  %v309_v6 = vmov 0   ;;  %vm55_vm1 = vcmask 64512   ;;  %v53_v8 = vld [vmem:[#allocation2] sm:$0xff]  ;;  %v54_v10 = vld [vmem:[#allocation2 + $0x8] sm:$0xff]  ;;  %vm213_vm2 = vcmask 1041409  }
  0x10   :  { %v43_v4 = vshrl.u32 %v42_v0, 7  ;;  %245 = vmatprep.subr.mxu1 %v306_v1  ;;  %247 = vmatprep.mubr.msk.f32.mxu1 %vm307_vm0, %v306_v1  ;;  %v233_v9 = vld.sshfl [vmem:[%s344_s1] sm:$0x11 pattern:$0x75316420]  ;;  %s310_s1 = smov [#allocation5]  }
  0x11   :  { %v41_v5 = vunpack.c.0.s8 %v40_v3  ;;  %258 = vset.pattern.permute.xlu0 %v309_v6  ;;  %241 = vmatpush3.msra.mxu0 %v53_v8  ;;  %v38_v12 = vcombine.high %v233_v9, %v233_v9  ;;  %v200_v13 = vld [vmem:[%s345_s2] sm:$0x3]  ;;  %s224_s22 = sshll.u32 %s310_s1, 4  ;;  %vm216_vm3 = vcmask 254976   ;;  %s225_s22 = int_to_ptr.vmem [resolvable:$true] %s224_s22 }
  0x12   :  { %246 = vmatpush3.msra.mxu1 %v54_v10  ;;  %203 = vperm.xlu0 %258, %v200_v13   ;;  %s279_s2 = scalar_lea.vmem %s225_s22, 32  ;;  %p284_p6 = scmp.lt.s32.totalorder %s225_s22, %s225_s22 }
  0x13   :  { %v44_v7 = vsub.s32 %v41_v5, %v43_v4  ;;  %p280_p5 = scmp.ne.s32.totalorder %s225_s22, %s279_s2  ;;  %p285_p7 = scmp.lt.s32.totalorder %s279_s2, %s279_s2 }
  0x15   :  { %v45_v11 = vrot.slane %v233_v9, %v44_v7  ;;  %v52_v14 = vrot.slane %v38_v12, %v44_v7  ;;  %p286_p8 = por %p285_p7, %p284_p6 }
  0x17   :  { %243 = vmatmul.mubr.msk.f32.vlgmr.msra.gmra.mxu0 %vm55_vm1, %v45_v11  ;;  %248 = vmatmul.mubr.msk.f32.vlgmr.msra.gmra.mxu1 %vm55_vm1, %v52_v14  ;;  %p287_p9 = pnand %p286_p8, %p280_p5 }
  0x8d   :  { %v204_v15 = vpop.permute.xlu0 %203 }
  0x8e   :  { %v205_v16 = vrot.slane %v204_v15, 1 }
  0xd7   :  { %v124_v17 = vpop.f32.mrf.mxu0  ;;  %v196_v18 = vpop.f32.mrf.mxu1 }
  0xd8   :  { %v209_v20 = vmul.f32 %v205_v16, %v196_v18  ;;  %v208_v22 = vmul.f32 %v204_v15, %v124_v17 }
  0xd9   :  { %v244_v19 = vpop.f32.mrf.mxu0  ;;  %v249_v21 = vpop.f32.mrf.mxu1 }
  0xda   :  { %v212_v23 = vrot.slane %v209_v20, 7 }
  0xdc   :  { %v214_v24 = vsel %vm213_vm2, %v212_v23, %v208_v22 }
  0xdd   :  { %217 = vst.msk [vmem:[#allocation5] sm:$0x3] %vm216_vm3, %v214_v24 }
  0xde   :  { %290 = shalt.err (!%p287_p9)
}
  0xdf   :  { %227 = dma.vmem_to_hbm [thread:$0]  %s225_s22, 32, %s346_s3, [#allocation4]  }
  0xe0   :  { %301 = dma.done.wait [#allocation4], 32  }
  0xe1   :  { %302 = vsyncadd [#allocation4], 4294967264 }
  0xe2   :  { %231 = vsyncpa [#allocation3], 1 }
  0xe3   :  { %232 = vsyncpa [#allocation4], 1 }

</bundles_post_ra>
